<compile_context>
chip_gen: v6e
topology: v6e:2x2x1
jax: 0.10.0
libtpu: 0.0.40
codegen_flags: <defaults>
</compile_context>

<pallas_src>
import jax
import jax.numpy as jnp
import numpy as np
from jax.experimental import pallas as pl
from jax.experimental.pallas import tpu as pltpu

# ----------------------------- model dims (small synthetic) -----------------------------
B, C, H, W = 2, 4, 16, 16
KH = KW = 3
NUM_FTRS = 32          # backbone output features
PROJ_HIDDEN = 64
PRED_HIDDEN = 64
OUT_DIM = 32
EPS = 1e-5

LANE = 128             # TPU lane width — pad all feature dims to this
K_RAW = C * KH * KW    # 36 (im2col patch length)
K_PAD = LANE
F_PAD = LANE
PROJ_PAD = LANE
PRED_PAD = LANE
OUT_PAD = LANE
R = B * H * W          # 512 im2col rows (spatial positions)

# rows of the stacked vector-parameter array (one (8,128) vreg)
V_CONV_B, V_PROJ_G1, V_PROJ_BE1, V_PROJ_B2, V_PRED_G1, V_PRED_BE1, V_PRED_B2 = range(7)
N_VEC_ROWS = 8         # pad to a full (8, 128) tile

_VMEM = pl.BlockSpec(memory_space=pltpu.MemorySpace.VMEM)


# ----------------------------- fused Pallas kernel -----------------------------
def byol_fused_kernel(patches_ref, pool_ref, vecs_ref,
                      cw_ref, w1_ref, w2_ref, w3_ref, w4_ref,
                      out_ref):
    """Backbone (im2col conv matmul + ReLU + avg-pool-as-matmul) fused with the
    projection head (Linear->BN->ReLU->Linear) and prediction head (same)."""
    f32 = jnp.float32

    # All 1-row parameters live in a single (8, 128) vreg; slice rows once.
    vecs = vecs_ref[...]
    cb  = vecs[V_CONV_B:V_CONV_B + 1, :]
    g1  = vecs[V_PROJ_G1:V_PROJ_G1 + 1, :]
    be1 = vecs[V_PROJ_BE1:V_PROJ_BE1 + 1, :]
    b2  = vecs[V_PROJ_B2:V_PROJ_B2 + 1, :]
    g3  = vecs[V_PRED_G1:V_PRED_G1 + 1, :]
    be3 = vecs[V_PRED_BE1:V_PRED_BE1 + 1, :]
    b4  = vecs[V_PRED_B2:V_PRED_B2 + 1, :]

    # --- backbone: conv as matmul + bias + ReLU ---------------------------------
    # (R, K_PAD) @ (K_PAD, F_PAD) — all lane dims are 128-aligned.
    act = jnp.dot(patches_ref[...], cw_ref[...], preferred_element_type=f32)
    act = jnp.maximum(act + cb, 0.0)

    # --- global average pool on the MXU: (B, R) @ (R, F_PAD) --------------------
    y = jnp.dot(pool_ref[...], act, preferred_element_type=f32)

    # --- Linear -> BatchNorm(batch stats) -> ReLU block --------------------------
    def linear_bn_relu(x, w_ref, g, be):
        h = jnp.dot(x, w_ref[...], preferred_element_type=f32)
        mu = jnp.mean(h, axis=0, keepdims=True)
        hc = h - mu                                   # centered value, reused below
        var = jnp.mean(hc * hc, axis=0, keepdims=True)
        hn = hc * jax.lax.rsqrt(var + EPS)            # rsqrt -> EUP slot
        return jnp.maximum(hn * g + be, 0.0)

    # projection head
    h = linear_bn_relu(y, w1_ref, g1, be1)
    z = jnp.dot(h, w2_ref[...], preferred_element_type=f32) + b2

    # prediction head
    h2 = linear_bn_relu(z, w3_ref, g3, be3)
    p = jnp.dot(h2, w4_ref[...], preferred_element_type=f32) + b4

    out_ref[...] = p                                  # (B, 128): unmasked lane-dense store


# ----------------------------- wrapper glue -----------------------------
def im2col(x):
    """x: (B, C, H, W) NCHW -> patches (B*H*W, C*KH*KW), channel-major flatten
    (matches torch conv weight.reshape(F, C*KH*KW))."""
    xp = jnp.pad(x, ((0, 0), (0, 0), (1, 1), (1, 1)))
    cols = [xp[:, :, kh:kh + H, kw:kw + W] for kh in range(KH) for kw in range(KW)]
    patches = jnp.stack(cols, axis=2)                 # (B, C, KH*KW, H, W)
    patches = patches.transpose(0, 3, 4, 1, 2)        # (B, H, W, C, KH*KW)
    return patches.reshape(R, K_RAW)


def _pad2(a, rows, cols):
    return jnp.pad(a, ((0, rows - a.shape[0]), (0, cols - a.shape[1])))


def _pad_row(a, cols):
    return jnp.pad(a, ((0, 0), (0, cols - a.shape[1])))[0]


@jax.jit
def byol_forward(x, params):
    patches = _pad2(im2col(x), R, K_PAD)                                   # (512, 128)
    # pooling matrix: P[b, r] = 1/(H*W) if r belongs to batch b (constant, folded by jit)
    pool = jnp.repeat(jnp.eye(B, dtype=jnp.float32), H * W, axis=1) / (H * W)   # (B, R)

    # zero-pad all parameters so every feature/lane dim is 128 wide.  Padded gamma/beta/
    # bias columns are 0, so padded output columns stay exactly 0 through both heads.
    cw = _pad2(params["conv_w"], K_PAD, F_PAD)
    w1 = _pad2(params["proj_w1"], F_PAD, PROJ_PAD)
    w2 = _pad2(params["proj_w2"], PROJ_PAD, OUT_PAD)
    w3 = _pad2(params["pred_w1"], OUT_PAD, PRED_PAD)
    w4 = _pad2(params["pred_w2"], PRED_PAD, OUT_PAD)

    # all seven 1-row vector params packed into one (8, 128) array = one vreg
    vecs = jnp.zeros((N_VEC_ROWS, LANE), jnp.float32)
    vecs = vecs.at[V_CONV_B].set(_pad_row(params["conv_b"], F_PAD))
    vecs = vecs.at[V_PROJ_G1].set(_pad_row(params["proj_g1"], PROJ_PAD))
    vecs = vecs.at[V_PROJ_BE1].set(_pad_row(params["proj_be1"], PROJ_PAD))
    vecs = vecs.at[V_PROJ_B2].set(_pad_row(params["proj_b2"], OUT_PAD))
    vecs = vecs.at[V_PRED_G1].set(_pad_row(params["pred_g1"], PRED_PAD))
    vecs = vecs.at[V_PRED_BE1].set(_pad_row(params["pred_be1"], PRED_PAD))
    vecs = vecs.at[V_PRED_B2].set(_pad_row(params["pred_b2"], OUT_PAD))

    p_pad = pl.pallas_call(
        byol_fused_kernel,
        out_shape=jax.ShapeDtypeStruct((B, OUT_PAD), jnp.float32),
        in_specs=[_VMEM] * 8,
        out_specs=_VMEM,
    )(patches, pool, vecs, cw, w1, w2, w3, w4)

    return p_pad[:, :OUT_DIM]


# ----------------------------- pure-JAX reference (float32, unpadded) -----------------------------
def byol_reference(x, params):
    patches = im2col(x)
    act = jnp.maximum(patches @ params["conv_w"] + params["conv_b"], 0.0)
    y = jnp.mean(act.reshape(B, H * W, NUM_FTRS), axis=1)

    def bn(h, g, be):
        mu = jnp.mean(h, axis=0, keepdims=True)
        var = jnp.mean((h - mu) ** 2, axis=0, keepdims=True)
        return (h - mu) * jax.lax.rsqrt(var + EPS) * g + be

    h = jnp.maximum(bn(y @ params["proj_w1"], params["proj_g1"], params["proj_be1"]), 0.0)
    z = h @ params["proj_w2"] + params["proj_b2"]
    h2 = jnp.maximum(bn(z @ params["pred_w1"], params["pred_g1"], params["pred_be1"]), 0.0)
    return h2 @ params["pred_w2"] + params["pred_b2"]


# ----------------------------- parameter init -----------------------------
def init_params(key):
    ks = jax.random.split(key, 8)
    # conv weight stored torch-style (F, C, KH, KW) then flattened to matmul form (C*KH*KW, F)
    conv_w_t = 0.1 * jax.random.normal(ks[0], (NUM_FTRS, C, KH, KW), jnp.float32)
    params = {
        "conv_w": conv_w_t.reshape(NUM_FTRS, C * KH * KW).T,
        "conv_b": 0.1 * jax.random.normal(ks[1], (1, NUM_FTRS), jnp.float32),
        # projection head: Linear(NUM_FTRS->PROJ_HIDDEN, no bias), BN, ReLU, Linear(->OUT_DIM)
        "proj_w1": 0.1 * jax.random.normal(ks[2], (NUM_FTRS, PROJ_HIDDEN), jnp.float32),
        "proj_g1": jnp.ones((1, PROJ_HIDDEN), jnp.float32),
        "proj_be1": jnp.zeros((1, PROJ_HIDDEN), jnp.float32),
        "proj_w2": 0.1 * jax.random.normal(ks[3], (PROJ_HIDDEN, OUT_DIM), jnp.float32),
        "proj_b2": 0.1 * jax.random.normal(ks[4], (1, OUT_DIM), jnp.float32),
        # prediction head: Linear(OUT_DIM->PRED_HIDDEN, no bias), BN, ReLU, Linear(->OUT_DIM)
        "pred_w1": 0.1 * jax.random.normal(ks[5], (OUT_DIM, PRED_HIDDEN), jnp.float32),
        "pred_g1": jnp.ones((1, PRED_HIDDEN), jnp.float32),
        "pred_be1": jnp.zeros((1, PRED_HIDDEN), jnp.float32),
        "pred_w2": 0.1 * jax.random.normal(ks[6], (PRED_HIDDEN, OUT_DIM), jnp.float32),
        "pred_b2": 0.1 * jax.random.normal(ks[7], (1, OUT_DIM), jnp.float32),
    }
    return params


if __name__ == "__main__":
    key = jax.random.PRNGKey(0)
    k_x, k_p = jax.random.split(key)
    x = jax.random.normal(k_x, (B, C, H, W), jnp.float32)   # NCHW, matching PyTorch
    params = init_params(k_p)

    p = jax.block_until_ready(byol_forward(x, params))

    p_ref = byol_reference(x, params)
    assert p.shape == (B, OUT_DIM)
    np.testing.assert_allclose(np.asarray(p), np.asarray(p_ref), rtol=1e-4, atol=1e-4)

    # TODO(synk): forward_momentum (EMA backbone/projection copies) is not part of
    # forward(); not implemented.
    print("KERNEL_OK")
</pallas_src>

<mosaic_0001>
module attributes {stable_mosaic.version = 11 : i64} {
  func.func @byol_fused_kernel(%arg0: memref<512x128xf32, #tpu.memory_space<vmem>>, %arg1: memref<2x512xf32, #tpu.memory_space<vmem>>, %arg2: memref<8x128xf32, #tpu.memory_space<vmem>>, %arg3: memref<128x128xf32, #tpu.memory_space<vmem>>, %arg4: memref<128x128xf32, #tpu.memory_space<vmem>>, %arg5: memref<128x128xf32, #tpu.memory_space<vmem>>, %arg6: memref<128x128xf32, #tpu.memory_space<vmem>>, %arg7: memref<128x128xf32, #tpu.memory_space<vmem>>, %arg8: memref<2x128xf32, #tpu.memory_space<vmem>>) attributes {dimension_semantics = [], scalar_prefetch = 0 : i64, scratch_operands = 0 : i64, tpu.core_type = #tpu.core_type<tc>} {
    %c0 = arith.constant 0 : index
    %c0_0 = arith.constant 0 : index
    %0 = vector.load %arg2[%c0, %c0_0] : memref<8x128xf32, #tpu.memory_space<vmem>>, vector<8x128xf32>
    %1 = vector.extract_strided_slice %0 {offsets = [0, 0], sizes = [1, 128], strides = [1, 1]} : vector<8x128xf32> to vector<1x128xf32>
    %2 = vector.extract_strided_slice %0 {offsets = [1, 0], sizes = [1, 128], strides = [1, 1]} : vector<8x128xf32> to vector<1x128xf32>
    %3 = vector.extract_strided_slice %0 {offsets = [2, 0], sizes = [1, 128], strides = [1, 1]} : vector<8x128xf32> to vector<1x128xf32>
    %4 = vector.extract_strided_slice %0 {offsets = [3, 0], sizes = [1, 128], strides = [1, 1]} : vector<8x128xf32> to vector<1x128xf32>
    %5 = vector.extract_strided_slice %0 {offsets = [4, 0], sizes = [1, 128], strides = [1, 1]} : vector<8x128xf32> to vector<1x128xf32>
    %6 = vector.extract_strided_slice %0 {offsets = [5, 0], sizes = [1, 128], strides = [1, 1]} : vector<8x128xf32> to vector<1x128xf32>
    %7 = vector.extract_strided_slice %0 {offsets = [6, 0], sizes = [1, 128], strides = [1, 1]} : vector<8x128xf32> to vector<1x128xf32>
    %c0_1 = arith.constant 0 : index
    %c0_2 = arith.constant 0 : index
    %8 = vector.load %arg0[%c0_1, %c0_2] : memref<512x128xf32, #tpu.memory_space<vmem>>, vector<512x128xf32>
    %c0_3 = arith.constant 0 : index
    %c0_4 = arith.constant 0 : index
    %9 = vector.load %arg3[%c0_3, %c0_4] : memref<128x128xf32, #tpu.memory_space<vmem>>, vector<128x128xf32>
    %cst = arith.constant dense<0.000000e+00> : vector<512x128xf32>
    %10 = tpu.matmul %8, %9, %cst {dimension_numbers = #tpu.dot_dimension_numbers<[1], [0], [0], [1], [0, 0, 1, 1], [], []>} : vector<512x128xf32>, vector<128x128xf32>, vector<512x128xf32> -> vector<512x128xf32>
    %11 = vector.broadcast %1 : vector<1x128xf32> to vector<512x128xf32>
    %12 = arith.addf %10, %11 : vector<512x128xf32>
    %cst_5 = arith.constant 0.000000e+00 : f32
    %13 = vector.broadcast %cst_5 : f32 to vector<512x128xf32>
    %14 = arith.maximumf %12, %13 : vector<512x128xf32>
    %c0_6 = arith.constant 0 : index
    %c0_7 = arith.constant 0 : index
    %15 = vector.load %arg1[%c0_6, %c0_7] : memref<2x512xf32, #tpu.memory_space<vmem>>, vector<2x512xf32>
    %cst_8 = arith.constant dense<0.000000e+00> : vector<2x128xf32>
    %16 = tpu.matmul %15, %14, %cst_8 {dimension_numbers = #tpu.dot_dimension_numbers<[1], [0], [0], [1], [0, 0, 1, 1], [], []>} : vector<2x512xf32>, vector<512x128xf32>, vector<2x128xf32> -> vector<2x128xf32>
    %c0_9 = arith.constant 0 : index
    %c0_10 = arith.constant 0 : index
    %17 = vector.load %arg4[%c0_9, %c0_10] : memref<128x128xf32, #tpu.memory_space<vmem>>, vector<128x128xf32>
    %cst_11 = arith.constant dense<0.000000e+00> : vector<2x128xf32>
    %18 = tpu.matmul %16, %17, %cst_11 {dimension_numbers = #tpu.dot_dimension_numbers<[1], [0], [0], [1], [0, 0, 1, 1], [], []>} : vector<2x128xf32>, vector<128x128xf32>, vector<2x128xf32> -> vector<2x128xf32>
    %cst_12 = arith.constant dense<0.000000e+00> : vector<128xf32>
    %19 = vector.multi_reduction <add>, %18, %cst_12 [0] : vector<2x128xf32> to vector<128xf32>
    %20 = vector.shape_cast %19 : vector<128xf32> to vector<1x128xf32>
    %cst_13 = arith.constant 2.000000e+00 : f32
    %21 = vector.broadcast %cst_13 : f32 to vector<1x128xf32>
    %22 = arith.divf %20, %21 : vector<1x128xf32>
    %23 = vector.broadcast %22 : vector<1x128xf32> to vector<2x128xf32>
    %24 = arith.subf %18, %23 : vector<2x128xf32>
    %25 = arith.mulf %24, %24 : vector<2x128xf32>
    %cst_14 = arith.constant dense<0.000000e+00> : vector<128xf32>
    %26 = vector.multi_reduction <add>, %25, %cst_14 [0] : vector<2x128xf32> to vector<128xf32>
    %27 = vector.shape_cast %26 : vector<128xf32> to vector<1x128xf32>
    %cst_15 = arith.constant 2.000000e+00 : f32
    %28 = vector.broadcast %cst_15 : f32 to vector<1x128xf32>
    %29 = arith.divf %27, %28 : vector<1x128xf32>
    %cst_16 = arith.constant 9.99999974E-6 : f32
    %30 = vector.broadcast %cst_16 : f32 to vector<1x128xf32>
    %31 = arith.addf %29, %30 : vector<1x128xf32>
    %32 = math.rsqrt %31 : vector<1x128xf32>
    %33 = vector.broadcast %32 : vector<1x128xf32> to vector<2x128xf32>
    %34 = arith.mulf %24, %33 : vector<2x128xf32>
    %35 = vector.broadcast %2 : vector<1x128xf32> to vector<2x128xf32>
    %36 = arith.mulf %34, %35 : vector<2x128xf32>
    %37 = vector.broadcast %3 : vector<1x128xf32> to vector<2x128xf32>
    %38 = arith.addf %36, %37 : vector<2x128xf32>
    %cst_17 = arith.constant 0.000000e+00 : f32
    %39 = vector.broadcast %cst_17 : f32 to vector<2x128xf32>
    %40 = arith.maximumf %38, %39 : vector<2x128xf32>
    %c0_18 = arith.constant 0 : index
    %c0_19 = arith.constant 0 : index
    %41 = vector.load %arg5[%c0_18, %c0_19] : memref<128x128xf32, #tpu.memory_space<vmem>>, vector<128x128xf32>
    %cst_20 = arith.constant dense<0.000000e+00> : vector<2x128xf32>
    %42 = tpu.matmul %40, %41, %cst_20 {dimension_numbers = #tpu.dot_dimension_numbers<[1], [0], [0], [1], [0, 0, 1, 1], [], []>} : vector<2x128xf32>, vector<128x128xf32>, vector<2x128xf32> -> vector<2x128xf32>
    %43 = vector.broadcast %4 : vector<1x128xf32> to vector<2x128xf32>
    %44 = arith.addf %42, %43 : vector<2x128xf32>
    %c0_21 = arith.constant 0 : index
    %c0_22 = arith.constant 0 : index
    %45 = vector.load %arg6[%c0_21, %c0_22] : memref<128x128xf32, #tpu.memory_space<vmem>>, vector<128x128xf32>
    %cst_23 = arith.constant dense<0.000000e+00> : vector<2x128xf32>
    %46 = tpu.matmul %44, %45, %cst_23 {dimension_numbers = #tpu.dot_dimension_numbers<[1], [0], [0], [1], [0, 0, 1, 1], [], []>} : vector<2x128xf32>, vector<128x128xf32>, vector<2x128xf32> -> vector<2x128xf32>
    %cst_24 = arith.constant dense<0.000000e+00> : vector<128xf32>
    %47 = vector.multi_reduction <add>, %46, %cst_24 [0] : vector<2x128xf32> to vector<128xf32>
    %48 = vector.shape_cast %47 : vector<128xf32> to vector<1x128xf32>
    %cst_25 = arith.constant 2.000000e+00 : f32
    %49 = vector.broadcast %cst_25 : f32 to vector<1x128xf32>
    %50 = arith.divf %48, %49 : vector<1x128xf32>
    %51 = vector.broadcast %50 : vector<1x128xf32> to vector<2x128xf32>
    %52 = arith.subf %46, %51 : vector<2x128xf32>
    %53 = arith.mulf %52, %52 : vector<2x128xf32>
    %cst_26 = arith.constant dense<0.000000e+00> : vector<128xf32>
    %54 = vector.multi_reduction <add>, %53, %cst_26 [0] : vector<2x128xf32> to vector<128xf32>
    %55 = vector.shape_cast %54 : vector<128xf32> to vector<1x128xf32>
    %cst_27 = arith.constant 2.000000e+00 : f32
    %56 = vector.broadcast %cst_27 : f32 to vector<1x128xf32>
    %57 = arith.divf %55, %56 : vector<1x128xf32>
    %cst_28 = arith.constant 9.99999974E-6 : f32
    %58 = vector.broadcast %cst_28 : f32 to vector<1x128xf32>
    %59 = arith.addf %57, %58 : vector<1x128xf32>
    %60 = math.rsqrt %59 : vector<1x128xf32>
    %61 = vector.broadcast %60 : vector<1x128xf32> to vector<2x128xf32>
    %62 = arith.mulf %52, %61 : vector<2x128xf32>
    %63 = vector.broadcast %5 : vector<1x128xf32> to vector<2x128xf32>
    %64 = arith.mulf %62, %63 : vector<2x128xf32>
    %65 = vector.broadcast %6 : vector<1x128xf32> to vector<2x128xf32>
    %66 = arith.addf %64, %65 : vector<2x128xf32>
    %cst_29 = arith.constant 0.000000e+00 : f32
    %67 = vector.broadcast %cst_29 : f32 to vector<2x128xf32>
    %68 = arith.maximumf %66, %67 : vector<2x128xf32>
    %c0_30 = arith.constant 0 : index
    %c0_31 = arith.constant 0 : index
    %69 = vector.load %arg7[%c0_30, %c0_31] : memref<128x128xf32, #tpu.memory_space<vmem>>, vector<128x128xf32>
    %cst_32 = arith.constant dense<0.000000e+00> : vector<2x128xf32>
    %70 = tpu.matmul %68, %69, %cst_32 {dimension_numbers = #tpu.dot_dimension_numbers<[1], [0], [0], [1], [0, 0, 1, 1], [], []>} : vector<2x128xf32>, vector<128x128xf32>, vector<2x128xf32> -> vector<2x128xf32>
    %71 = vector.broadcast %7 : vector<1x128xf32> to vector<2x128xf32>
    %72 = arith.addf %70, %71 : vector<2x128xf32>
    %c0_33 = arith.constant 0 : index
    %c0_34 = arith.constant 0 : index
    %73 = vector.load %arg8[%c0_33, %c0_34] : memref<2x128xf32, #tpu.memory_space<vmem>>, vector<2x128xf32>
    tpu.vector_store %arg8[%c0_33, %c0_34], %72 {strides = array<i32>} : memref<2x128xf32, #tpu.memory_space<vmem>>, vector<2x128xf32>,
    return
  }
}

</mosaic_0001>

<bundles_post_ra>
// kernel: byol_forward.1
= control target key start
LH: loop header
LB: loop body
LE: loop exit
PB: predicated region body
PF: predicated region fallthrough
CT: control target
= control target key end

     0   :  { %s2440_s0 = inlined_call_operand.vmem [shape: f32[512,128], index: 0, kind: input, shape index: {}]   ;;  %s2441_s1 = inlined_call_operand.vmem [shape: f32[2,512], index: 1, kind: input, shape index: {}]   ;;  %s2442_s2 = inlined_call_operand.vmem [shape: f32[8,128], index: 2, kind: input, shape index: {}]   ;;  %s2443_s3 = inlined_call_operand.vmem [shape: f32[128,128], index: 3, kind: input, shape index: {}]   ;;  %s2444_s4 = inlined_call_operand.vmem [shape: f32[128,128], index: 4, kind: input, shape index: {}]   ;;  %s2445_s5 = inlined_call_operand.vmem [shape: f32[128,128], index: 5, kind: input, shape index: {}]   ;;  %s2446_s6 = inlined_call_operand.vmem [shape: f32[128,128], index: 6, kind: input, shape index: {}]   ;;  %s2447_s7 = inlined_call_operand.vmem [shape: f32[128,128], index: 7, kind: input, shape index: {}]   ;;  %s2448_s8 = inlined_call_operand.hbm [shape: f32[2,128], index: 8, kind: output, shape index: {}]  }
   0x1   :  { %v110_v0 = vld [vmem:[%s2443_s3 + $0x78] sm:$0xff]  ;;  %v109_v1 = vld [vmem:[%s2443_s3 + $0x70] sm:$0xff]  ;;  %v108_v2 = vld [vmem:[%s2443_s3 + $0x68] sm:$0xff] }
   0x2   :  { %1378 = vmatprep.subr.mxu0 %v110_v0  ;;  %v107_v3 = vld [vmem:[%s2443_s3 + $0x60] sm:$0xff]  ;;  %v106_v5 = vld [vmem:[%s2443_s3 + $0x58] sm:$0xff]  ;;  %v105_v6 = vld [vmem:[%s2443_s3 + $0x50] sm:$0xff] }
   0x3   :  { %1379 = vmatpush3.msra.mxu0 %v110_v0  ;;  %v31_v4 = vld [vmem:[%s2440_s0] sm:$0xff]  ;;  %v104_v7 = vld [vmem:[%s2443_s3 + $0x48] sm:$0xff]  ;;  %v102_v9 = vld [vmem:[%s2443_s3 + $0x38] sm:$0xff] }
   0x4   :  { %1380 = vmatprep.subr.mxu0 %v109_v1  ;;  %1410 = vmatprep.mubr.f32.mxu0 %v31_v4  ;;  %v103_v8 = vld [vmem:[%s2443_s3 + $0x40] sm:$0xff]  ;;  %v101_v10 = vld [vmem:[%s2443_s3 + $0x30] sm:$0xff]  ;;  %v100_v11 = vld [vmem:[%s2443_s3 + $0x28] sm:$0xff] }
   0x5   :  { %1381 = vmatpush3.msra.mxu0 %v109_v1  ;;  %v99_v12 = vld [vmem:[%s2443_s3 + $0x20] sm:$0xff]  ;;  %v98_v13 = vld [vmem:[%s2443_s3 + $0x18] sm:$0xff]  ;;  %v97_v14 = vld [vmem:[%s2443_s3 + $0x10] sm:$0xff] }
   0x6   :  { %1382 = vmatprep.subr.mxu0 %v108_v2  ;;  %v96_v15 = vld [vmem:[%s2443_s3 + $0x8] sm:$0xff] }
   0x7   :  { %1383 = vmatpush3.msra.mxu0 %v108_v2 }
   0x8   :  { %1384 = vmatprep.subr.mxu0 %v107_v3 }
   0x9   :  { %1385 = vmatpush3.msra.mxu0 %v107_v3 }
   0xa   :  { %1386 = vmatprep.subr.mxu0 %v106_v5 }
   0xb   :  { %1387 = vmatpush3.msra.mxu0 %v106_v5 }
   0xc   :  { %1388 = vmatprep.subr.mxu0 %v105_v6 }
   0xd   :  { %1389 = vmatpush3.msra.mxu0 %v105_v6 }
   0xe   :  { %1390 = vmatprep.subr.mxu0 %v104_v7 }
   0xf   :  { %1391 = vmatpush3.msra.mxu0 %v104_v7 }
  0x10   :  { %1392 = vmatprep.subr.mxu0 %v103_v8 }
  0x11   :  { %1393 = vmatpush3.msra.mxu0 %v103_v8 }
  0x12   :  { %1394 = vmatprep.subr.mxu0 %v102_v9 }
  0x13   :  { %1395 = vmatpush3.msra.mxu0 %v102_v9 }
  0x14   :  { %1396 = vmatprep.subr.mxu0 %v101_v10 }
  0x15   :  { %1397 = vmatpush3.msra.mxu0 %v101_v10 }
  0x16   :  { %1398 = vmatprep.subr.mxu0 %v100_v11 }
  0x17   :  { %1399 = vmatpush3.msra.mxu0 %v100_v11 }
  0x18   :  { %1400 = vmatprep.subr.mxu0 %v99_v12 }
  0x19   :  { %1401 = vmatpush3.msra.mxu0 %v99_v12 }
  0x1a   :  { %1402 = vmatprep.subr.mxu0 %v98_v13 }
  0x1b   :  { %1403 = vmatpush3.msra.mxu0 %v98_v13 }
  0x1c   :  { %13 = vsyncpa [#allocation3], 0  ;;  %1404 = vmatprep.subr.mxu0 %v97_v14  ;;  %v95_v16 = vld [vmem:[%s2443_s3] sm:$0xff]  ;;  %v32_v17 = vld [vmem:[%s2440_s0 + $0x8] sm:$0xff]  ;;  %vm1680_vm0 = vmmov 0   ;;  %vm813_vm1 = vcmask 1041408  }
  0x1d   :  { %1405 = vmatpush3.msra.mxu0 %v97_v14  ;;  %v33_v18 = vld [vmem:[%s2440_s0 + $0x10] sm:$0xff]  ;;  %v34_v19 = vld [vmem:[%s2440_s0 + $0x18] sm:$0xff]  ;;  %v35_v20 = vld [vmem:[%s2440_s0 + $0x20] sm:$0xff]  ;;  %s1681_s26 = smov [#allocation2]  }
  0x1e   :  { %1406 = vmatprep.subr.mxu0 %v96_v15  ;;  %v36_v21 = vld [vmem:[%s2440_s0 + $0x28] sm:$0xff]  ;;  %v37_v22 = vld [vmem:[%s2440_s0 + $0x30] sm:$0xff]  ;;  %v38_v23 = vld [vmem:[%s2440_s0 + $0x38] sm:$0xff]  ;;  %s1152_s27 = sshll.u32 %s1681_s26, 4  ;;  %s1153_s27 = int_to_ptr.vmem [resolvable:$true] %s1152_s27 }
  0x1f   :  { %1407 = vmatpush3.msra.mxu0 %v96_v15  ;;  %v39_v24 = vld [vmem:[%s2440_s0 + $0x40] sm:$0xff]  ;;  %v40_v25 = vld [vmem:[%s2440_s0 + $0x48] sm:$0xff]  ;;  %v41_v26 = vld [vmem:[%s2440_s0 + $0x50] sm:$0xff]  ;;  %s1656_s28 = scalar_lea.vmem %s1153_s27, 32  ;;  %p1661_p1 = scmp.lt.s32.totalorder %s1153_s27, %s1153_s27 }
  0x20   :  { %1408 = vmatprep.subr.mxu0 %v95_v16  ;;  %v42_v27 = vld [vmem:[%s2440_s0 + $0x58] sm:$0xff]  ;;  %v43_v28 = vld [vmem:[%s2440_s0 + $0x60] sm:$0xff]  ;;  %v44_v29 = vld [vmem:[%s2440_s0 + $0x68] sm:$0xff]  ;;  %p1657_p0 = scmp.ne.s32.totalorder %s1153_s27, %s1656_s28  ;;  %p1662_p2 = scmp.lt.s32.totalorder %s1656_s28, %s1656_s28 }
  0x21   :  { %1409 = vmatpush3.msra.mxu0 %v95_v16  ;;  %v45_v30 = vld [vmem:[%s2440_s0 + $0x70] sm:$0xff]  ;;  %v46_v31 = vld [vmem:[%s2440_s0 + $0x78] sm:$0xff]  ;;  %v47_v32 = vld [vmem:[%s2440_s0 + $0x80] sm:$0xff]  ;;  %v111_v16 = vlaneseq }
  0x22   :  { %1411 = vmatmul.mubr.f32.vlgmr.msra.gmra.mxu0 %v32_v17  ;;  %v48_v33 = vld [vmem:[%s2440_s0 + $0x88] sm:$0xff]  ;;  %v49_v34 = vld [vmem:[%s2440_s0 + $0x90] sm:$0xff]  ;;  %v50_v35 = vld [vmem:[%s2440_s0 + $0x98] sm:$0xff]  ;;  %v1678_v17 = vmov 1983009808   ;;  %p1663_p3 = por %p1662_p2, %p1661_p1 }
  0x23   :  { %1413 = vmatprep.mubr.f32.mxu0 %v33_v18  ;;  %v51_v36 = vld [vmem:[%s2440_s0 + $0xa0] sm:$0xff]  ;;  %v52_v37 = vld [vmem:[%s2440_s0 + $0xa8] sm:$0xff]  ;;  %v53_v38 = vld [vmem:[%s2440_s0 + $0xb0] sm:$0xff]  ;;  %v568_v18 = vunpack.c.l.s4 %v1678_v17 }
  0x24   :  { %v54_v39 = vld [vmem:[%s2440_s0 + $0xb8] sm:$0xff]  ;;  %v55_v40 = vld [vmem:[%s2440_s0 + $0xc0] sm:$0xff]  ;;  %v56_v41 = vld [vmem:[%s2440_s0 + $0xc8] sm:$0xff]  ;;  %p1664_p4 = pnand %p1663_p3, %p1657_p0 }
  0x25   :  { %v57_v42 = vld [vmem:[%s2440_s0 + $0xd0] sm:$0xff]  ;;  %v58_v43 = vld [vmem:[%s2440_s0 + $0xd8] sm:$0xff]  ;;  %v59_v44 = vld [vmem:[%s2440_s0 + $0xe0] sm:$0xff] }
  0x26   :  { %1414 = vmatmul.mubr.f32.gmra.mxu0 %v34_v19  ;;  %v60_v45 = vld [vmem:[%s2440_s0 + $0xe8] sm:$0xff]  ;;  %v61_v46 = vld [vmem:[%s2440_s0 + $0xf0] sm:$0xff]  ;;  %v62_v47 = vld [vmem:[%s2440_s0 + $0xf8] sm:$0xff]  ;;  %v1967_v19 = vshrl.u32 %v111_v16, 7 }
  0x27   :  { %1416 = vmatprep.mubr.f32.mxu0 %v35_v20  ;;  %v63_v48 = vld [vmem:[%s2440_s0 + $0x100] sm:$0xff]  ;;  %v64_v49 = vld [vmem:[%s2440_s0 + $0x108] sm:$0xff]  ;;  %v65_v50 = vld [vmem:[%s2440_s0 + $0x110] sm:$0xff]  ;;  %v569_v20 = vunpack.c.0.s8 %v568_v18 }
  0x28   :  { %v66_v51 = vld [vmem:[%s2440_s0 + $0x118] sm:$0xff]  ;;  %v67_v52 = vld [vmem:[%s2440_s0 + $0x120] sm:$0xff]  ;;  %v68_v53 = vld [vmem:[%s2440_s0 + $0x128] sm:$0xff] }
  0x29   :  { %v69_v54 = vld [vmem:[%s2440_s0 + $0x130] sm:$0xff]  ;;  %v70_v55 = vld [vmem:[%s2440_s0 + $0x138] sm:$0xff]  ;;  %v71_v56 = vld [vmem:[%s2440_s0 + $0x140] sm:$0xff] }
  0x2a   :  { %1417 = vmatmul.mubr.f32.gmra.mxu0 %v36_v21  ;;  %v72_v57 = vld [vmem:[%s2440_s0 + $0x148] sm:$0xff]  ;;  %v73_v58 = vld [vmem:[%s2440_s0 + $0x150] sm:$0xff]  ;;  %v74_v59 = vld [vmem:[%s2440_s0 + $0x158] sm:$0xff]  ;;  %v572_v21 = vsub.s32 %v569_v20, %v1967_v19 }
  0x2b   :  { %1419 = vmatprep.mubr.f32.mxu0 %v37_v22  ;;  %v75_v60 = vld [vmem:[%s2440_s0 + $0x160] sm:$0xff]  ;;  %v76_v61 = vld [vmem:[%s2440_s0 + $0x168] sm:$0xff]  ;;  %v77_v62 = vld [vmem:[%s2440_s0 + $0x170] sm:$0xff] }
  0x2c   :  { %v78_v63 = vld [vmem:[%s2440_s0 + $0x178] sm:$0xff]  ;;  %v79_v0 = vld [vmem:[%s2440_s0 + $0x180] sm:$0xff]  ;;  %v80_v1 = vld [vmem:[%s2440_s0 + $0x188] sm:$0xff] }
  0x2d   :  { %v81_v2 = vld [vmem:[%s2440_s0 + $0x190] sm:$0xff]  ;;  %v82_v3 = vld [vmem:[%s2440_s0 + $0x198] sm:$0xff]  ;;  %v83_v4 = vld [vmem:[%s2440_s0 + $0x1a0] sm:$0xff] }
  0x2e   :  { %1420 = vmatmul.mubr.f32.gmra.mxu0 %v38_v23  ;;  %v84_v5 = vld [vmem:[%s2440_s0 + $0x1a8] sm:$0xff]  ;;  %v85_v6 = vld [vmem:[%s2440_s0 + $0x1b0] sm:$0xff]  ;;  %v86_v7 = vld [vmem:[%s2440_s0 + $0x1b8] sm:$0xff] }
  0x2f   :  { %1422 = vmatprep.mubr.f32.mxu0 %v39_v24  ;;  %v87_v8 = vld [vmem:[%s2440_s0 + $0x1c0] sm:$0xff]  ;;  %v88_v9 = vld [vmem:[%s2440_s0 + $0x1c8] sm:$0xff]  ;;  %v89_v10 = vld [vmem:[%s2440_s0 + $0x1d0] sm:$0xff] }
  0x30   :  { %v90_v11 = vld [vmem:[%s2440_s0 + $0x1d8] sm:$0xff]  ;;  %v91_v12 = vld [vmem:[%s2440_s0 + $0x1e0] sm:$0xff]  ;;  %v92_v13 = vld [vmem:[%s2440_s0 + $0x1e8] sm:$0xff] }
  0x31   :  { %v93_v14 = vld [vmem:[%s2440_s0 + $0x1f0] sm:$0xff]  ;;  %v94_v15 = vld [vmem:[%s2440_s0 + $0x1f8] sm:$0xff]  ;;  %v564_v22 = vld [vmem:[%s2441_s1] sm:$0xff] }
  0x32   :  { %1423 = vmatmul.mubr.f32.gmra.mxu0 %v40_v25  ;;  %v1973_v23 = vrot.slane %v564_v22, %v572_v21 }
  0x33   :  { %1425 = vmatprep.mubr.f32.mxu0 %v41_v26 }
  0x34   :  { %v581_v24 = vcombine.high %v1973_v23, %v1973_v23 }
  0x36   :  { %1426 = vmatmul.mubr.f32.gmra.mxu0 %v42_v27  ;;  %651 = vmatprep.mubr.f32.mxu1 %v581_v24 }
  0x37   :  { %1428 = vmatprep.mubr.f32.mxu0 %v43_v28 }
  0x3a   :  { %1429 = vmatmul.mubr.f32.gmra.mxu0 %v44_v29 }
  0x3b   :  { %1431 = vmatprep.mubr.f32.mxu0 %v45_v30 }
  0x3e   :  { %1432 = vmatmul.mubr.f32.gmra.mxu0 %v46_v31 }
  0x3f   :  { %1434 = vmatprep.mubr.f32.mxu0 %v47_v32 }
  0x42   :  { %1435 = vmatmul.mubr.f32.gmra.mxu0 %v48_v33 }
  0x43   :  { %1437 = vmatprep.mubr.f32.mxu0 %v49_v34 }
  0x46   :  { %1438 = vmatmul.mubr.f32.gmra.mxu0 %v50_v35 }
  0x47   :  { %1440 = vmatprep.mubr.f32.mxu0 %v51_v36 }
  0x4a   :  { %1441 = vmatmul.mubr.f32.gmra.mxu0 %v52_v37 }
  0x4b   :  { %1443 = vmatprep.mubr.f32.mxu0 %v53_v38  ;;  %v566_v38 = vcombine.high %v564_v22, %v564_v22 }
  0x4e   :  { %1444 = vmatmul.mubr.f32.gmra.mxu0 %v54_v39 }
  0x4f   :  { %1446 = vmatprep.mubr.f32.mxu0 %v55_v40 }
  0x52   :  { %1447 = vmatmul.mubr.f32.gmra.mxu0 %v56_v41  ;;  %v1995_v41 = vrot.slane %v566_v38, %v572_v21 }
  0x53   :  { %1449 = vmatprep.mubr.f32.mxu0 %v57_v42 }
  0x56   :  { %1450 = vmatmul.mubr.f32.gmra.mxu0 %v58_v43 }
  0x57   :  { %1452 = vmatprep.mubr.f32.mxu0 %v59_v44 }
  0x5a   :  { %1453 = vmatmul.mubr.f32.gmra.mxu0 %v60_v45 }
  0x5b   :  { %1455 = vmatprep.mubr.f32.mxu0 %v61_v46 }
  0x5e   :  { %1456 = vmatmul.mubr.f32.gmra.mxu0 %v62_v47 }
  0x5f   :  { %1458 = vmatprep.mubr.f32.mxu0 %v63_v48 }
  0x62   :  { %1459 = vmatmul.mubr.f32.gmra.mxu0 %v64_v49 }
  0x63   :  { %1461 = vmatprep.mubr.f32.mxu0 %v65_v50 }
  0x66   :  { %1462 = vmatmul.mubr.f32.gmra.mxu0 %v66_v51 }
  0x67   :  { %1464 = vmatprep.mubr.f32.mxu0 %v67_v52 }
  0x6a   :  { %1465 = vmatmul.mubr.f32.gmra.mxu0 %v68_v53 }
  0x6b   :  { %1467 = vmatprep.mubr.f32.mxu0 %v69_v54  ;;  %v113_v54 = vsub.s32 0, %v1967_v19 }
  0x6e   :  { %1468 = vmatmul.mubr.f32.gmra.mxu0 %v70_v55 }
  0x6f   :  { %1470 = vmatprep.mubr.f32.mxu0 %v71_v56  ;;  %v2015_v56 = vld [vmem:[%s2442_s2] sm:$0xff] }
  0x72   :  { %1471 = vmatmul.mubr.f32.gmra.mxu0 %v72_v57 }
  0x73   :  { %1473 = vmatprep.mubr.f32.mxu0 %v73_v58  ;;  %v2018_v58 = vrot.slane %v2015_v56, %v113_v54 }
  0x76   :  { %1474 = vmatmul.mubr.f32.gmra.mxu0 %v74_v59 }
  0x77   :  { %1476 = vmatprep.mubr.f32.mxu0 %v75_v60 }
  0x7a   :  { %1477 = vmatmul.mubr.f32.gmra.mxu0 %v76_v61 }
  0x7b   :  { %1479 = vmatprep.mubr.f32.mxu0 %v77_v62 }
  0x7e   :  { %1480 = vmatmul.mubr.f32.gmra.mxu0 %v78_v63 }
  0x7f   :  { %1482 = vmatprep.mubr.f32.mxu0 %v79_v0 }
  0x82   :  { %1483 = vmatmul.mubr.f32.gmra.mxu0 %v80_v1 }
  0x83   :  { %1485 = vmatprep.mubr.f32.mxu0 %v81_v2 }
  0x86   :  { %1486 = vmatmul.mubr.f32.gmra.mxu0 %v82_v3 }
  0x87   :  { %1488 = vmatprep.mubr.f32.mxu0 %v83_v4 }
  0x8a   :  { %1489 = vmatmul.mubr.f32.gmra.mxu0 %v84_v5 }
  0x8b   :  { %1491 = vmatprep.mubr.f32.mxu0 %v85_v6 }
  0x8e   :  { %1492 = vmatmul.mubr.f32.gmra.mxu0 %v86_v7 }
  0x8f   :  { %1494 = vmatprep.mubr.f32.mxu0 %v87_v8 }
  0x92   :  { %1495 = vmatmul.mubr.f32.gmra.mxu0 %v88_v9 }
  0x93   :  { %1497 = vmatprep.mubr.f32.mxu0 %v89_v10 }
  0x96   :  { %1498 = vmatmul.mubr.f32.gmra.mxu0 %v90_v11 }
  0x97   :  { %1500 = vmatprep.mubr.f32.mxu0 %v91_v12 }
  0x9a   :  { %1501 = vmatmul.mubr.f32.gmra.mxu0 %v92_v13 }
  0x9b   :  { %1503 = vmatprep.mubr.f32.mxu0 %v93_v14 }
  0x9e   :  { %1504 = vmatmul.mubr.f32.gmra.mxu0 %v94_v15 }
  0xe2   :  { %v1977_v25 = vpop.f32.mrf.mxu0 }
  0xe4   :  { %v1979_v26 = vpop.f32.mrf.mxu0 }
  0xe6   :  { %v1981_v27 = vpop.f32.mrf.mxu0 }
  0xe8   :  { %v1983_v28 = vpop.f32.mrf.mxu0 }
  0xea   :  { %v1985_v29 = vpop.f32.mrf.mxu0 }
  0xec   :  { %v1987_v30 = vpop.f32.mrf.mxu0 }
  0xee   :  { %v1989_v31 = vpop.f32.mrf.mxu0 }
  0xf0   :  { %v1991_v32 = vpop.f32.mrf.mxu0 }
  0xf2   :  { %v1424_v33 = vpop.f32.mrf.mxu0 }
  0xf4   :  { %v1993_v34 = vpop.f32.mrf.mxu0 }
  0xf6   :  { %v1427_v35 = vpop.f32.mrf.mxu0 }
  0xf7   :  { %v237_v14 = vadd.f32 %v1427_v35, %v2018_v58  ;;  %v227_v35 = vadd.f32 %v1424_v33, %v2018_v58  ;;  %v217_v33 = vadd.f32 %v1989_v31, %v2018_v58 }
  0xf8   :  { %v231_v36 = vpop.f32.mrf.mxu0 }
  0xf9   :  { %v232_v20 = vadd.f32 %v231_v36, %v2018_v58  ;;  %v511_v38 = vmax.f32 %v237_v14, 0.0  ;;  %v222_v36 = vadd.f32 %v1993_v34, %v2018_v58  ;;  %v212_v34 = vadd.f32 %v1991_v32, %v2018_v58 }
  0xfa   :  { %v1430_v37 = vpop.f32.mrf.mxu0 }
  0xfb   :  { %v247_v4 = vadd.f32 %v1430_v37, %v2018_v58 }
  0xfc   :  { %v241_v39 = vpop.f32.mrf.mxu0 }
  0xfd   :  { %v242_v9 = vadd.f32 %v241_v39, %v2018_v58  ;;  %v513_v15 = vmax.f32 %v247_v4, 0.0 }
  0xfe   :  { %v1433_v40 = vpop.f32.mrf.mxu0 }
  0xff   :  { %v257_v60 = vadd.f32 %v1433_v40, %v2018_v58  ;;  %v512_v21 = vmax.f32 %v242_v9, 0.0  ;;  %v192_v9 = vadd.f32 %v1983_v28, %v2018_v58  ;;  %v182_v28 = vadd.f32 %v1979_v26, %v2018_v58 }
 0x100   :  { %v251_v42 = vpop.f32.mrf.mxu0 }
 0x101   :  { %v252_v63 = vadd.f32 %v251_v42, %v2018_v58  ;;  %v515_v5 = vmax.f32 %v257_v60, 0.0 }
 0x102   :  { %v1997_v43 = vpop.f32.mrf.mxu0 }
 0x103   :  { %v514_v10 = vmax.f32 %v252_v63, 0.0  ;;  %v207_v63 = vadd.f32 %v1985_v29, %v2018_v58 }
 0x104   :  { %v1999_v44 = vpop.f32.mrf.mxu0 }
 0x106   :  { %v2001_v45 = vpop.f32.mrf.mxu0 }
 0x108   :  { %v2003_v46 = vpop.f32.mrf.mxu0 }
 0x10a   :  { %v2005_v47 = vpop.f32.mrf.mxu0 }
 0x10c   :  { %v2007_v48 = vpop.f32.mrf.mxu0 }
 0x10e   :  { %v1445_v49 = vpop.f32.mrf.mxu0 }
 0x110   :  { %v2009_v50 = vpop.f32.mrf.mxu0 }
 0x112   :  { %v1448_v51 = vpop.f32.mrf.mxu0 }
 0x113   :  { %v307_v24 = vadd.f32 %v1448_v51, %v2018_v58  ;;  %v297_v51 = vadd.f32 %v1445_v49, %v2018_v58  ;;  %v287_v49 = vadd.f32 %v2005_v47, %v2018_v58  ;;  %v277_v47 = vadd.f32 %v2001_v45, %v2018_v58 }
 0x114   :  { %v301_v52 = vpop.f32.mrf.mxu0  ;;  %v267_v45 = vadd.f32 %v1997_v43, %v2018_v58 }
 0x115   :  { %v302_v40 = vadd.f32 %v301_v52, %v2018_v58  ;;  %v292_v52 = vadd.f32 %v2009_v50, %v2018_v58  ;;  %v523_v31 = vmax.f32 %v297_v51, 0.0  ;;  %v282_v50 = vadd.f32 %v2007_v48, %v2018_v58 }
 0x116   :  { %v1451_v53 = vpop.f32.mrf.mxu0  ;;  %v521_v29 = vmax.f32 %v287_v49, 0.0  ;;  %v272_v48 = vadd.f32 %v2003_v46, %v2018_v58  ;;  %v262_v46 = vadd.f32 %v1999_v44, %v2018_v58  ;;  %v517_v43 = vmax.f32 %v267_v45, 0.0 }
 0x117   :  { %v317_v12 = vadd.f32 %v1451_v53, %v2018_v58  ;;  %v510_v53 = vmax.f32 %v232_v20, 0.0  ;;  %v524_v60 = vmax.f32 %v302_v40, 0.0  ;;  %v522_v32 = vmax.f32 %v292_v52, 0.0 }
 0x118   :  { %v311_v55 = vpop.f32.mrf.mxu0  ;;  %v582_v44 = vcombine.high %v1995_v41, %v1995_v41 }
 0x119   :  { %v312_v17 = vadd.f32 %v311_v55, %v2018_v58  ;;  %v527_v37 = vmax.f32 %v317_v12, 0.0  ;;  %v525_v55 = vmax.f32 %v307_v24, 0.0 }
 0x11a   :  { %v1454_v57 = vpop.f32.mrf.mxu0 }
 0x11b   :  { %v327_v1 = vadd.f32 %v1454_v57, %v2018_v58  ;;  %v526_v42 = vmax.f32 %v312_v17, 0.0  ;;  %v509_v57 = vmax.f32 %v227_v35, 0.0  ;;  %v518_v17 = vmax.f32 %v272_v48, 0.0 }
 0x11c   :  { %v321_v59 = vpop.f32.mrf.mxu0 }
 0x11d   :  { %v322_v7 = vadd.f32 %v321_v59, %v2018_v58  ;;  %v529_v13 = vmax.f32 %v327_v1, 0.0 }
 0x11e   :  { %v1457_v61 = vpop.f32.mrf.mxu0 }
 0x11f   :  { %v337_v62 = vadd.f32 %v1457_v61, %v2018_v58  ;;  %v528_v18 = vmax.f32 %v322_v7, 0.0  ;;  %v508_v61 = vmax.f32 %v222_v36, 0.0  ;;  %v505_v7 = vmax.f32 %v207_v63, 0.0 }
 0x120   :  { %v331_v0 = vpop.f32.mrf.mxu0 }
 0x121   :  { %v332_v2 = vadd.f32 %v331_v0, %v2018_v58  ;;  %v531_v3 = vmax.f32 %v337_v62, 0.0  ;;  %v507_v0 = vmax.f32 %v217_v33, 0.0 }
 0x122   :  { %v2026_v6 = vpop.f32.mrf.mxu0 }
 0x123   :  { %v530_v8 = vmax.f32 %v332_v2, 0.0  ;;  %1240 = vmatprep.subr.mxu1 %v531_v3  ;;  %v202_v2 = vadd.f32 %v1987_v30, %v2018_v58  ;;  %v506_v3 = vmax.f32 %v212_v34, 0.0  ;;  %v520_v30 = vmax.f32 %v282_v50, 0.0 }
 0x124   :  { %v2030_v11 = vpop.f32.mrf.mxu0  ;;  %1241 = vmatpush3.msra.mxu1 %v515_v5  ;;  %v197_v5 = vadd.f32 %v1981_v27, %v2018_v58  ;;  %v519_v27 = vmax.f32 %v277_v47, 0.0 }
 0x125   :  { %1242 = vmatprep.subr.mxu1 %v530_v8 }
 0x126   :  { %v2034_v16 = vpop.f32.mrf.mxu0  ;;  %1243 = vmatpush3.msra.mxu1 %v514_v10  ;;  %v504_v10 = vmax.f32 %v202_v2, 0.0  ;;  %v503_v14 = vmax.f32 %v197_v5, 0.0 }
 0x127   :  { %1244 = vmatprep.subr.mxu1 %v529_v13  ;;  %v187_v13 = vadd.f32 %v1977_v25, %v2018_v58  ;;  %v516_v25 = vmax.f32 %v262_v46, 0.0 }
 0x128   :  { %v2038_v22 = vpop.f32.mrf.mxu0  ;;  %1245 = vmatpush3.msra.mxu1 %v513_v15 }
 0x129   :  { %1246 = vmatprep.subr.mxu1 %v528_v18  ;;  %v502_v18 = vmax.f32 %v192_v9, 0.0 }
 0x12a   :  { %v2042_v39 = vpop.f32.mrf.mxu0  ;;  %1247 = vmatpush3.msra.mxu1 %v512_v21  ;;  %v501_v21 = vmax.f32 %v187_v13, 0.0 }
 0x12b   :  { %1248 = vmatprep.subr.mxu1 %v527_v37  ;;  %v500_v37 = vmax.f32 %v182_v28, 0.0 }
 0x12c   :  { %v2047_v54 = vpop.f32.mrf.mxu0  ;;  %1249 = vmatpush3.msra.mxu1 %v511_v38 }
 0x12d   :  { %1250 = vmatprep.subr.mxu1 %v526_v42 }
 0x12e   :  { %v2052_v59 = vpop.f32.mrf.mxu0  ;;  %1251 = vmatpush3.msra.mxu1 %v510_v53 }
 0x12f   :  { %1252 = vmatprep.subr.mxu1 %v525_v55 }
 0x130   :  { %v2058_v62 = vpop.f32.mrf.mxu0  ;;  %1253 = vmatpush3.msra.mxu1 %v509_v57 }
 0x131   :  { %1254 = vmatprep.subr.mxu1 %v524_v60 }
 0x132   :  { %v2064_v1 = vpop.f32.mrf.mxu0  ;;  %1255 = vmatpush3.msra.mxu1 %v508_v61 }
 0x133   :  { %1256 = vmatprep.subr.mxu1 %v523_v31  ;;  %v387_v28 = vadd.f32 %v2064_v1, %v2018_v58 }
 0x134   :  { %v2070_v4 = vpop.f32.mrf.mxu0  ;;  %1257 = vmatpush3.msra.mxu1 %v507_v0 }
 0x135   :  { %1258 = vmatprep.subr.mxu1 %v522_v32 }
 0x136   :  { %v2076_v8 = vpop.f32.mrf.mxu0  ;;  %1259 = vmatpush3.msra.mxu1 %v506_v3 }
 0x137   :  { %1260 = vmatprep.subr.mxu1 %v521_v29 }
 0x138   :  { %v2082_v12 = vpop.f32.mrf.mxu0  ;;  %1261 = vmatpush3.msra.mxu1 %v505_v7 }
 0x139   :  { %1262 = vmatprep.subr.mxu1 %v520_v30 }
 0x13a   :  { %v1478_v15 = vpop.f32.mrf.mxu0  ;;  %1263 = vmatpush3.msra.mxu1 %v504_v10  ;;  %v397_v10 = vadd.f32 %v2076_v8, %v2018_v58 }
 0x13b   :  { %1264 = vmatprep.subr.mxu1 %v519_v27  ;;  %v407_v3 = vadd.f32 %v1478_v15, %v2018_v58 }
 0x13c   :  { %v401_v20 = vpop.f32.mrf.mxu0  ;;  %1265 = vmatpush3.msra.mxu1 %v503_v14  ;;  %v392_v14 = vadd.f32 %v2082_v12, %v2018_v58 }
 0x13d   :  { %1266 = vmatprep.subr.mxu1 %v518_v17  ;;  %v402_v7 = vadd.f32 %v401_v20, %v2018_v58  ;;  %v545_v45 = vmax.f32 %v407_v3, 0.0 }
 0x13e   :  { %v1481_v24 = vpop.f32.mrf.mxu0  ;;  %1267 = vmatpush3.msra.mxu1 %v502_v18  ;;  %v543_v18 = vmax.f32 %v397_v10, 0.0  ;;  %v731_v10 = vld [vmem:[%s2444_s4 + $0x20] sm:$0xff] }
 0x13f   :  { %1268 = vmatprep.subr.mxu1 %v517_v43  ;;  %v544_v15 = vmax.f32 %v402_v7, 0.0  ;;  %v382_v43 = vadd.f32 %v2070_v4, %v2018_v58  ;;  %v735_v7 = vld [vmem:[%s2444_s4 + $0x40] sm:$0xff] }
 0x140   :  { %v411_v35 = vpop.f32.mrf.mxu0  ;;  %1269 = vmatpush3.msra.mxu1 %v501_v21  ;;  %v542_v21 = vmax.f32 %v392_v14, 0.0  ;;  %v727_v14 = vld [vmem:[%s2444_s4] sm:$0xff] }
 0x141   :  { %1270 = vmatprep.subr.mxu1 %v516_v25  ;;  %v412_v63 = vadd.f32 %v411_v35, %v2018_v58  ;;  %v377_v25 = vadd.f32 %v2052_v59, %v2018_v58 }
 0x142   :  { %v2094_v38 = vpop.f32.mrf.mxu0  ;;  %1271 = vmatpush3.msra.mxu1 %v500_v37  ;;  %v541_v37 = vmax.f32 %v387_v28, 0.0 }
 0x143   :  { %652 = vmatmul.mubr.f32.vlgmr.msra.gmra.mxu1 %v1973_v23  ;;  %v417_v23 = vadd.f32 %v1481_v24, %v2018_v58  ;;  %v546_v48 = vmax.f32 %v412_v63, 0.0 }
 0x144   :  { %v2097_v26 = vpop.f32.mrf.mxu0  ;;  %721 = vmatprep.mubr.f32.mxu1 %v582_v44  ;;  %v372_v44 = vadd.f32 %v2058_v62, %v2018_v58 }
 0x145   :  { %v547_v47 = vmax.f32 %v417_v23, 0.0 }
 0x146   :  { %v2099_v40 = vpop.f32.mrf.mxu0  ;;  %v538_v62 = vmax.f32 %v372_v44, 0.0  ;;  %v854_v44 = vld [vmem:[%s2445_s5 + $0x38] sm:$0xff] }
 0x148   :  { %v2101_v42 = vpop.f32.mrf.mxu0 }
 0x14a   :  { %v1490_v36 = vpop.f32.mrf.mxu0 }
 0x14b   :  { %v447_v4 = vadd.f32 %v1490_v36, %v2018_v58  ;;  %v437_v36 = vadd.f32 %v2099_v40, %v2018_v58  ;;  %v427_v40 = vadd.f32 %v2094_v38, %v2018_v58 }
 0x14c   :  { %v2103_v53 = vpop.f32.mrf.mxu0 }
 0x14d   :  { %v442_v59 = vadd.f32 %v2103_v53, %v2018_v58  ;;  %v432_v53 = vadd.f32 %v2101_v42, %v2018_v58  ;;  %v422_v42 = vadd.f32 %v2097_v26, %v2018_v58  ;;  %v1679_v26 = vmov 0.0  }
 0x14e   :  { %v1493_v51 = vpop.f32.mrf.mxu0  ;;  %1576 = vmatprep.subr.mxu0 %v1679_v26  ;;  %1608 = vmatprep.mubr.msk.f32.mxu0 %vm1680_vm0, %v1679_v26 }
 0x14f   :  { %v457_v12 = vadd.f32 %v1493_v51, %v2018_v58  ;;  %v367_v51 = vadd.f32 %v2042_v39, %v2018_v58  ;;  %v357_v39 = vadd.f32 %v2034_v16, %v2018_v58  ;;  %v552_v23 = vmax.f32 %v442_v59, 0.0  ;;  %v848_v59 = vld [vmem:[%s2445_s5 + $0x8] sm:$0xff] }
 0x150   :  { %v451_v55 = vpop.f32.mrf.mxu0  ;;  %v347_v16 = vadd.f32 %v2026_v6, %v2018_v58  ;;  %v742_v6 = vld [vmem:[%s2444_s4 + $0x78] sm:$0xff] }
 0x151   :  { %v452_v1 = vadd.f32 %v451_v55, %v2018_v58  ;;  %v535_v63 = vmax.f32 %v357_v39, 0.0  ;;  %v948_v39 = vld [vmem:[%s2446_s6 + $0x58] sm:$0xff] }
 0x152   :  { %v1496_v33 = vpop.f32.mrf.mxu0  ;;  %v533_v38 = vmax.f32 %v347_v16, 0.0  ;;  %v940_v16 = vld [vmem:[%s2446_s6 + $0x18] sm:$0xff] }
 0x153   :  { %v467_v46 = vadd.f32 %v1496_v33, %v2018_v58  ;;  %v540_v33 = vmax.f32 %v382_v43, 0.0  ;;  %v554_v55 = vmax.f32 %v452_v1, 0.0  ;;  %v862_v43 = vld [vmem:[%s2445_s5 + $0x78] sm:$0xff]  ;;  %v856_v1 = vld [vmem:[%s2445_s5 + $0x48] sm:$0xff] }
 0x154   :  { %v461_v57 = vpop.f32.mrf.mxu0 }
 0x155   :  { %v462_v8 = vadd.f32 %v461_v57, %v2018_v58  ;;  %v557_v24 = vmax.f32 %v467_v46, 0.0  ;;  %v555_v57 = vmax.f32 %v457_v12, 0.0  ;;  %v860_v12 = vld [vmem:[%s2445_s5 + $0x68] sm:$0xff] }
 0x156   :  { %v1499_v52 = vpop.f32.mrf.mxu0 }
 0x157   :  { %v477_v30 = vadd.f32 %v1499_v52, %v2018_v58  ;;  %v556_v35 = vmax.f32 %v462_v8, 0.0  ;;  %v539_v52 = vmax.f32 %v377_v25, 0.0  ;;  %v858_v25 = vld [vmem:[%s2445_s5 + $0x58] sm:$0xff] }
 0x158   :  { %v471_v60 = vpop.f32.mrf.mxu0 }
 0x159   :  { %v472_v27 = vadd.f32 %v471_v60, %v2018_v58  ;;  %v559_v17 = vmax.f32 %v477_v30, 0.0  ;;  %v362_v60 = vadd.f32 %v2047_v54, %v2018_v58  ;;  %v352_v54 = vadd.f32 %v2038_v22, %v2018_v58  ;;  %v733_v30 = vld [vmem:[%s2444_s4 + $0x30] sm:$0xff] }
 0x15a   :  { %v1502_v34 = vpop.f32.mrf.mxu0  ;;  %v342_v22 = vadd.f32 %v2030_v11, %v2018_v58  ;;  %v739_v11 = vld [vmem:[%s2444_s4 + $0x60] sm:$0xff] }
 0x15b   :  { %v487_v50 = vadd.f32 %v1502_v34, %v2018_v58  ;;  %v558_v20 = vmax.f32 %v472_v27, 0.0  ;;  %v553_v34 = vmax.f32 %v447_v4, 0.0  ;;  %v729_v27 = vld [vmem:[%s2444_s4 + $0x10] sm:$0xff]  ;;  %v852_v4 = vld [vmem:[%s2445_s5 + $0x28] sm:$0xff] }
 0x15c   :  { %v481_v61 = vpop.f32.mrf.mxu0  ;;  %v532_v3 = vmax.f32 %v342_v22, 0.0 }
 0x15d   :  { %v482_v29 = vadd.f32 %v481_v61, %v2018_v58  ;;  %v561_v9 = vmax.f32 %v487_v50, 0.0  ;;  %v537_v61 = vmax.f32 %v367_v51, 0.0  ;;  %v534_v50 = vmax.f32 %v352_v54, 0.0  ;;  %v850_v51 = vld [vmem:[%s2445_s5 + $0x18] sm:$0xff] }
 0x15e   :  { %v1505_v49 = vpop.f32.mrf.mxu0  ;;  %v944_v54 = vld [vmem:[%s2446_s6 + $0x38] sm:$0xff] }
 0x15f   :  { %v497_v31 = vadd.f32 %v1505_v49, %v2018_v58  ;;  %v560_v13 = vmax.f32 %v482_v29, 0.0  ;;  %v536_v49 = vmax.f32 %v362_v60, 0.0  ;;  %v737_v29 = vld [vmem:[%s2444_s4 + $0x50] sm:$0xff]  ;;  %v952_v60 = vld [vmem:[%s2446_s6 + $0x78] sm:$0xff] }
 0x160   :  { %v491_v0 = vpop.f32.mrf.mxu0  ;;  %1577 = vmatpush3.msra.mxu0 %v952_v60  ;;  %v1060_v60 = vld [vmem:[%s2447_s7 + $0x28] sm:$0xff] }
 0x161   :  { %v563_v32 = vmax.f32 %v497_v31, 0.0  ;;  %v492_v2 = vadd.f32 %v491_v0, %v2018_v58  ;;  %v551_v31 = vmax.f32 %v437_v36, 0.0  ;;  %v550_v0 = vmax.f32 %v432_v53, 0.0  ;;  %v741_v58 = vld [vmem:[%s2444_s4 + $0x70] sm:$0xff]  ;;  %1578 = vmatprep.subr.mxu0 %v1679_v26  ;;  %v950_v36 = vld [vmem:[%s2446_s6 + $0x68] sm:$0xff] }
 0x162   :  { %v946_v53 = vld [vmem:[%s2446_s6 + $0x48] sm:$0xff] }
 0x163   :  { %v562_v5 = vmax.f32 %v492_v2, 0.0  ;;  %1275 = vmatprep.subr.mxu1 %v563_v32  ;;  %v549_v32 = vmax.f32 %v427_v40, 0.0  ;;  %v548_v2 = vmax.f32 %v422_v42, 0.0  ;;  %v942_v40 = vld [vmem:[%s2446_s6 + $0x28] sm:$0xff] }
 0x164   :  { %1276 = vmatpush3.msra.mxu1 %v547_v47  ;;  %v738_v47 = vld [vmem:[%s2444_s4 + $0x58] sm:$0xff]  ;;  %v938_v42 = vld [vmem:[%s2446_s6 + $0x8] sm:$0xff] }
 0x165   :  { %1277 = vmatprep.subr.mxu1 %v562_v5  ;;  %v736_v5 = vld [vmem:[%s2444_s4 + $0x48] sm:$0xff] }
 0x166   :  { %1278 = vmatpush3.msra.mxu1 %v546_v48  ;;  %v734_v48 = vld [vmem:[%s2444_s4 + $0x38] sm:$0xff] }
 0x167   :  { %1279 = vmatprep.subr.mxu1 %v561_v9  ;;  %v732_v9 = vld [vmem:[%s2444_s4 + $0x28] sm:$0xff] }
 0x168   :  { %1280 = vmatpush3.msra.mxu1 %v545_v45  ;;  %v730_v45 = vld [vmem:[%s2444_s4 + $0x18] sm:$0xff] }
 0x169   :  { %1281 = vmatprep.subr.mxu1 %v560_v13  ;;  %v728_v13 = vld [vmem:[%s2444_s4 + $0x8] sm:$0xff] }
 0x16a   :  { %1282 = vmatpush3.msra.mxu1 %v544_v15 }
 0x16b   :  { %1283 = vmatprep.subr.mxu1 %v559_v17 }
 0x16c   :  { %1284 = vmatpush3.msra.mxu1 %v543_v18 }
 0x16d   :  { %1285 = vmatprep.subr.mxu1 %v558_v20 }
 0x16e   :  { %1286 = vmatpush3.msra.mxu1 %v542_v21  ;;  %v861_v21 = vld [vmem:[%s2445_s5 + $0x70] sm:$0xff] }
 0x16f   :  { %1287 = vmatprep.subr.mxu1 %v557_v24  ;;  %v859_v24 = vld [vmem:[%s2445_s5 + $0x60] sm:$0xff] }
 0x170   :  { %1288 = vmatpush3.msra.mxu1 %v541_v37  ;;  %v857_v37 = vld [vmem:[%s2445_s5 + $0x50] sm:$0xff] }
 0x171   :  { %1289 = vmatprep.subr.mxu1 %v556_v35  ;;  %v855_v35 = vld [vmem:[%s2445_s5 + $0x40] sm:$0xff] }
 0x172   :  { %1290 = vmatpush3.msra.mxu1 %v540_v33  ;;  %v853_v33 = vld [vmem:[%s2445_s5 + $0x30] sm:$0xff] }
 0x173   :  { %1291 = vmatprep.subr.mxu1 %v555_v57  ;;  %v851_v57 = vld [vmem:[%s2445_s5 + $0x20] sm:$0xff] }
 0x174   :  { %1292 = vmatpush3.msra.mxu1 %v539_v52  ;;  %v849_v52 = vld [vmem:[%s2445_s5 + $0x10] sm:$0xff] }
 0x175   :  { %1293 = vmatprep.subr.mxu1 %v554_v55  ;;  %v847_v55 = vld [vmem:[%s2445_s5] sm:$0xff] }
 0x176   :  { %1294 = vmatpush3.msra.mxu1 %v538_v62  ;;  %v951_v62 = vld [vmem:[%s2446_s6 + $0x70] sm:$0xff] }
 0x177   :  { %1295 = vmatprep.subr.mxu1 %v553_v34  ;;  %1579 = vmatpush3.msra.mxu0 %v951_v62  ;;  %v949_v34 = vld [vmem:[%s2446_s6 + $0x60] sm:$0xff] }
 0x178   :  { %1296 = vmatpush3.msra.mxu1 %v537_v61  ;;  %1580 = vmatprep.subr.mxu0 %v1679_v26  ;;  %v947_v61 = vld [vmem:[%s2446_s6 + $0x50] sm:$0xff]  ;;  %v1059_v62 = vld [vmem:[%s2447_s7 + $0x20] sm:$0xff] }
 0x179   :  { %1297 = vmatprep.subr.mxu1 %v552_v23  ;;  %1581 = vmatpush3.msra.mxu0 %v950_v36  ;;  %v945_v23 = vld [vmem:[%s2446_s6 + $0x40] sm:$0xff]  ;;  %v1058_v36 = vld [vmem:[%s2447_s7 + $0x18] sm:$0xff] }
 0x17a   :  { %1298 = vmatpush3.msra.mxu1 %v536_v49  ;;  %1582 = vmatprep.subr.mxu0 %v1679_v26  ;;  %v943_v49 = vld [vmem:[%s2446_s6 + $0x30] sm:$0xff] }
 0x17b   :  { %1299 = vmatprep.subr.mxu1 %v551_v31  ;;  %1583 = vmatpush3.msra.mxu0 %v949_v34  ;;  %v941_v31 = vld [vmem:[%s2446_s6 + $0x20] sm:$0xff]  ;;  %v1057_v34 = vld [vmem:[%s2447_s7 + $0x10] sm:$0xff] }
 0x17c   :  { %1300 = vmatpush3.msra.mxu1 %v535_v63  ;;  %1584 = vmatprep.subr.mxu0 %v1679_v26  ;;  %v939_v63 = vld [vmem:[%s2446_s6 + $0x10] sm:$0xff] }
 0x17d   :  { %1301 = vmatprep.subr.mxu1 %v550_v0  ;;  %1585 = vmatpush3.msra.mxu0 %v948_v39  ;;  %v937_v0 = vld [vmem:[%s2446_s6] sm:$0xff]  ;;  %v1056_v39 = vld [vmem:[%s2447_s7 + $0x8] sm:$0xff] }
 0x17e   :  { %1302 = vmatpush3.msra.mxu1 %v534_v50  ;;  %1586 = vmatprep.subr.mxu0 %v1679_v26 }
 0x17f   :  { %1303 = vmatprep.subr.mxu1 %v549_v32  ;;  %1587 = vmatpush3.msra.mxu0 %v947_v61  ;;  %v1055_v61 = vld [vmem:[%s2447_s7] sm:$0xff] }
 0x180   :  { %1304 = vmatpush3.msra.mxu1 %v533_v38  ;;  %1588 = vmatprep.subr.mxu0 %v1679_v26 }
 0x181   :  { %1305 = vmatprep.subr.mxu1 %v548_v2  ;;  %1589 = vmatpush3.msra.mxu0 %v946_v53 }
 0x182   :  { %1306 = vmatpush3.msra.mxu1 %v532_v3  ;;  %1590 = vmatprep.subr.mxu0 %v1679_v26 }
 0x183   :  { %722 = vmatmul.mubr.f32.vlgmr.msra.gmra.mxu1 %v1995_v41  ;;  %1506 = vmatprep.subr.mxu1 %v1679_v26  ;;  %v740_v41 = vld [vmem:[%s2444_s4 + $0x68] sm:$0xff] }
 0x184   :  { %1507 = vmatpush3.msra.mxu1 %v742_v6  ;;  %1538 = vmatprep.mubr.msk.f32.mxu1 %vm1680_vm0, %v1679_v26 }
 0x185   :  { %1508 = vmatprep.subr.mxu1 %v1679_v26  ;;  %1591 = vmatpush3.msra.mxu0 %v945_v23 }
 0x186   :  { %1509 = vmatpush3.msra.mxu1 %v741_v58  ;;  %1592 = vmatprep.subr.mxu0 %v1679_v26 }
 0x187   :  { %1510 = vmatprep.subr.mxu1 %v1679_v26  ;;  %1593 = vmatpush3.msra.mxu0 %v944_v54 }
 0x188   :  { %1511 = vmatpush3.msra.mxu1 %v740_v41  ;;  %1594 = vmatprep.subr.mxu0 %v1679_v26 }
 0x189   :  { %1512 = vmatprep.subr.mxu1 %v1679_v26  ;;  %1595 = vmatpush3.msra.mxu0 %v943_v49 }
 0x18a   :  { %1513 = vmatpush3.msra.mxu1 %v739_v11  ;;  %1596 = vmatprep.subr.mxu0 %v1679_v26 }
 0x18b   :  { %1514 = vmatprep.subr.mxu1 %v1679_v26  ;;  %1597 = vmatpush3.msra.mxu0 %v942_v40 }
 0x18c   :  { %1515 = vmatpush3.msra.mxu1 %v738_v47  ;;  %1598 = vmatprep.subr.mxu0 %v1679_v26 }
 0x18d   :  { %1516 = vmatprep.subr.mxu1 %v1679_v26  ;;  %1599 = vmatpush3.msra.mxu0 %v941_v31 }
 0x18e   :  { %1517 = vmatpush3.msra.mxu1 %v737_v29  ;;  %1600 = vmatprep.subr.mxu0 %v1679_v26 }
 0x18f   :  { %1518 = vmatprep.subr.mxu1 %v1679_v26  ;;  %1601 = vmatpush3.msra.mxu0 %v940_v16 }
 0x190   :  { %1519 = vmatpush3.msra.mxu1 %v736_v5  ;;  %1602 = vmatprep.subr.mxu0 %v1679_v26 }
 0x191   :  { %1520 = vmatprep.subr.mxu1 %v1679_v26  ;;  %1603 = vmatpush3.msra.mxu0 %v939_v63 }
 0x192   :  { %1521 = vmatpush3.msra.mxu1 %v735_v7  ;;  %1604 = vmatprep.subr.mxu0 %v1679_v26 }
 0x193   :  { %1522 = vmatprep.subr.mxu1 %v1679_v26  ;;  %1605 = vmatpush3.msra.mxu0 %v938_v42 }
 0x194   :  { %1523 = vmatpush3.msra.mxu1 %v734_v48  ;;  %1606 = vmatprep.subr.mxu0 %v1679_v26 }
 0x195   :  { %1524 = vmatprep.subr.mxu1 %v1679_v26  ;;  %1607 = vmatpush3.msra.mxu0 %v937_v0 }
 0x196   :  { %1525 = vmatpush3.msra.mxu1 %v733_v30 }
 0x197   :  { %1526 = vmatprep.subr.mxu1 %v1679_v26 }
 0x198   :  { %1527 = vmatpush3.msra.mxu1 %v732_v9 }
 0x199   :  { %1528 = vmatprep.subr.mxu1 %v1679_v26 }
 0x19a   :  { %1529 = vmatpush3.msra.mxu1 %v731_v10 }
 0x19b   :  { %1530 = vmatprep.subr.mxu1 %v1679_v26 }
 0x19c   :  { %1531 = vmatpush3.msra.mxu1 %v730_v45 }
 0x19d   :  { %1532 = vmatprep.subr.mxu1 %v1679_v26 }
 0x19e   :  { %1533 = vmatpush3.msra.mxu1 %v729_v27 }
 0x19f   :  { %1534 = vmatprep.subr.mxu1 %v1679_v26 }
 0x1a0   :  { %1535 = vmatpush3.msra.mxu1 %v728_v13 }
 0x1a1   :  { %1536 = vmatprep.subr.mxu1 %v1679_v26 }
 0x1a2   :  { %1537 = vmatpush3.msra.mxu1 %v727_v14  ;;  %v838_v14 = vsub.s32 1, %v1967_v19 }
 0x1a3   :  { %1541 = vmatprep.subr.mxu1 %v1679_v26 }
 0x203   :  { %v1272_v15 = vpop.f32.mrf.mxu1 }
 0x205   :  { %v1273_v46 = vpop.f32.mrf.mxu1 }
 0x206   :  { %v1274_v18 = vadd.f32 %v1273_v46, %v1272_v15  ;;  %v843_v15 = vsub.s32 2, %v1967_v19  ;;  %v839_v46 = vrot.slane %v2015_v56, %v838_v14 }
 0x243   :  { %v1307_v17 = vpop.f32.mrf.mxu1 }
 0x245   :  { %v1308_v28 = vpop.f32.mrf.mxu1 }
 0x246   :  { %v1309_v8 = vadd.f32 %v1308_v28, %v1307_v17 }
 0x248   :  { %v724_v20 = vadd.f32 %v1309_v8, %v1274_v18  ;;  %v844_v18 = vrot.slane %v2015_v56, %v843_v15 }
 0x24a   :  { %1539 = vmatmul.mubr.f32.vlgmr.msra.gmra.mxu1 %v724_v20 }
 0x24b   :  { %1573 = vmatprep.mubr.msk.f32.mxu1 %vm1680_vm0, %v1679_v26  ;;  %1542 = vmatpush3.msra.mxu1 %v862_v43 }
 0x24c   :  { %1543 = vmatprep.subr.mxu1 %v1679_v26 }
 0x24d   :  { %1544 = vmatpush3.msra.mxu1 %v861_v21  ;;  %v865_v21 = vsub.s32 3, %v1967_v19 }
 0x24e   :  { %1545 = vmatprep.subr.mxu1 %v1679_v26 }
 0x24f   :  { %1546 = vmatpush3.msra.mxu1 %v860_v12  ;;  %v866_v12 = vrot.slane %v2015_v56, %v865_v21 }
 0x250   :  { %1547 = vmatprep.subr.mxu1 %v1679_v26 }
 0x251   :  { %1548 = vmatpush3.msra.mxu1 %v859_v24 }
 0x252   :  { %1549 = vmatprep.subr.mxu1 %v1679_v26 }
 0x253   :  { %1550 = vmatpush3.msra.mxu1 %v858_v25 }
 0x254   :  { %1551 = vmatprep.subr.mxu1 %v1679_v26 }
 0x255   :  { %1552 = vmatpush3.msra.mxu1 %v857_v37 }
 0x256   :  { %1553 = vmatprep.subr.mxu1 %v1679_v26 }
 0x257   :  { %1554 = vmatpush3.msra.mxu1 %v856_v1  ;;  %v1070_v1 = vld [vmem:[%s2447_s7 + $0x78] sm:$0xff] }
 0x258   :  { %1555 = vmatprep.subr.mxu1 %v1679_v26 }
 0x259   :  { %1556 = vmatpush3.msra.mxu1 %v855_v35  ;;  %v1069_v35 = vld [vmem:[%s2447_s7 + $0x70] sm:$0xff] }
 0x25a   :  { %1557 = vmatprep.subr.mxu1 %v1679_v26 }
 0x25b   :  { %1558 = vmatpush3.msra.mxu1 %v854_v44  ;;  %v1068_v44 = vld [vmem:[%s2447_s7 + $0x68] sm:$0xff] }
 0x25c   :  { %1559 = vmatprep.subr.mxu1 %v1679_v26 }
 0x25d   :  { %1560 = vmatpush3.msra.mxu1 %v853_v33  ;;  %v1067_v33 = vld [vmem:[%s2447_s7 + $0x60] sm:$0xff] }
 0x25e   :  { %1561 = vmatprep.subr.mxu1 %v1679_v26 }
 0x25f   :  { %1562 = vmatpush3.msra.mxu1 %v852_v4  ;;  %v1066_v4 = vld [vmem:[%s2447_s7 + $0x58] sm:$0xff] }
 0x260   :  { %1563 = vmatprep.subr.mxu1 %v1679_v26 }
 0x261   :  { %1564 = vmatpush3.msra.mxu1 %v851_v57  ;;  %v1065_v57 = vld [vmem:[%s2447_s7 + $0x50] sm:$0xff] }
 0x262   :  { %1565 = vmatprep.subr.mxu1 %v1679_v26 }
 0x263   :  { %1566 = vmatpush3.msra.mxu1 %v850_v51  ;;  %v1064_v51 = vld [vmem:[%s2447_s7 + $0x48] sm:$0xff] }
 0x264   :  { %1567 = vmatprep.subr.mxu1 %v1679_v26 }
 0x265   :  { %1568 = vmatpush3.msra.mxu1 %v849_v52  ;;  %v1063_v52 = vld [vmem:[%s2447_s7 + $0x40] sm:$0xff] }
 0x266   :  { %1569 = vmatprep.subr.mxu1 %v1679_v26 }
 0x267   :  { %1570 = vmatpush3.msra.mxu1 %v848_v59  ;;  %v1062_v59 = vld [vmem:[%s2447_s7 + $0x38] sm:$0xff] }
 0x268   :  { %1571 = vmatprep.subr.mxu1 %v1679_v26 }
 0x269   :  { %1572 = vmatpush3.msra.mxu1 %v847_v55  ;;  %v1061_v55 = vld [vmem:[%s2447_s7 + $0x30] sm:$0xff] }
 0x26a   :  { %1611 = vmatprep.subr.mxu1 %v1679_v26 }
 0x30a   :  { %v809_v22 = vpop.f32.mrf.mxu1 }
 0x30b   :  { %v814_v50 = vsel %vm813_vm1, %v809_v22, 0.0 }
 0x30c   :  { %v815_v32 = vrot.slane %v814_v50, 4  ;;  %v1540_v38 = vpop.f32.mrf.mxu1 }
 0x30e   :  { %v816_v2 = vadd.f32 %v815_v32, %v814_v50 }
 0x310   :  { %v817_v3 = vrot.slane %v816_v2, 2 }
 0x312   :  { %v818_v6 = vadd.f32 %v817_v3, %v816_v2 }
 0x314   :  { %v819_v58 = vrot.slane %v818_v6, 1 }
 0x316   :  { %v820_v41 = vadd.f32 %v819_v58, %v818_v6 }
 0x318   :  { %v822_v11 = vmul.f32 0.5, %v820_v41 }
 0x31a   :  { %v823_v47 = vsub.f32 %v809_v22, %v822_v11 }
 0x31c   :  { %v824_v29 = vmul.f32 %v823_v47, %v823_v47 }
 0x31e   :  { %v825_v5 = vsel %vm813_vm1, %v824_v29, 0.0  ;;  %v1051_v29 = vsub.s32 5, %v1967_v19 }
 0x31f   :  { %v826_v7 = vrot.slane %v825_v5, 4 }
 0x321   :  { %v827_v48 = vadd.f32 %v826_v7, %v825_v5 }
 0x323   :  { %v828_v30 = vrot.slane %v827_v48, 2 }
 0x325   :  { %v829_v9 = vadd.f32 %v828_v30, %v827_v48  ;;  %v1052_v30 = vrot.slane %v2015_v56, %v1051_v29 }
 0x327   :  { %v830_v10 = vrot.slane %v829_v9, 1 }
 0x329   :  { %v831_v45 = vadd.f32 %v830_v10, %v829_v9 }
 0x32b   :  { %v832_v27 = vmul.f32 0.5, %v831_v45 }
 0x32d   :  { %v833_v13 = vadd.f32 1e-05, %v832_v27  ;;  %v1073_v27 = vsub.s32 6, %v1967_v19 }
 0x32f   :  { %1651 = vrsqrt.f32 %v833_v13  ;;  %v1655_v13 = vld [vmem:[%s2442_s2] sm:$0xff] }
 0x330   :  { %v1074_v14 = vrot.slane %v1655_v13, %v1073_v27 }
 0x33c   :  { %v1652_v17 = vpop.eup %1651 }
 0x33d   :  { %v835_v28 = vmul.f32 %v1652_v17, %v823_v47  ;;  %v1046_v47 = vsub.s32 4, %v1967_v19 }
 0x33f   :  { %v840_v8 = vmul.f32 %v839_v46, %v835_v28  ;;  %v1047_v5 = vrot.slane %v2015_v56, %v1046_v47 }
 0x341   :  { %v845_v20 = vadd.f32 %v844_v18, %v840_v8 }
 0x343   :  { %v846_v43 = vmax.f32 %v845_v20, 0.0 }
 0x345   :  { %1574 = vmatmul.mubr.f32.vlgmr.msra.gmra.mxu1 %v846_v43 }
 0x346   :  { %1643 = vmatprep.mubr.msk.f32.mxu1 %vm1680_vm0, %v1679_v26  ;;  %1612 = vmatpush3.msra.mxu1 %v1070_v1 }
 0x347   :  { %1613 = vmatprep.subr.mxu1 %v1679_v26 }
 0x348   :  { %1614 = vmatpush3.msra.mxu1 %v1069_v35 }
 0x349   :  { %1615 = vmatprep.subr.mxu1 %v1679_v26 }
 0x34a   :  { %1616 = vmatpush3.msra.mxu1 %v1068_v44 }
 0x34b   :  { %1617 = vmatprep.subr.mxu1 %v1679_v26 }
 0x34c   :  { %1618 = vmatpush3.msra.mxu1 %v1067_v33 }
 0x34d   :  { %1619 = vmatprep.subr.mxu1 %v1679_v26 }
 0x34e   :  { %1620 = vmatpush3.msra.mxu1 %v1066_v4 }
 0x34f   :  { %1621 = vmatprep.subr.mxu1 %v1679_v26 }
 0x350   :  { %1622 = vmatpush3.msra.mxu1 %v1065_v57 }
 0x351   :  { %1623 = vmatprep.subr.mxu1 %v1679_v26 }
 0x352   :  { %1624 = vmatpush3.msra.mxu1 %v1064_v51 }
 0x353   :  { %1625 = vmatprep.subr.mxu1 %v1679_v26 }
 0x354   :  { %1626 = vmatpush3.msra.mxu1 %v1063_v52 }
 0x355   :  { %1627 = vmatprep.subr.mxu1 %v1679_v26 }
 0x356   :  { %1628 = vmatpush3.msra.mxu1 %v1062_v59 }
 0x357   :  { %1629 = vmatprep.subr.mxu1 %v1679_v26 }
 0x358   :  { %1630 = vmatpush3.msra.mxu1 %v1061_v55 }
 0x359   :  { %1631 = vmatprep.subr.mxu1 %v1679_v26 }
 0x35a   :  { %1632 = vmatpush3.msra.mxu1 %v1060_v60 }
 0x35b   :  { %1633 = vmatprep.subr.mxu1 %v1679_v26 }
 0x35c   :  { %1634 = vmatpush3.msra.mxu1 %v1059_v62 }
 0x35d   :  { %1635 = vmatprep.subr.mxu1 %v1679_v26 }
 0x35e   :  { %1636 = vmatpush3.msra.mxu1 %v1058_v36 }
 0x35f   :  { %1637 = vmatprep.subr.mxu1 %v1679_v26 }
 0x360   :  { %1638 = vmatpush3.msra.mxu1 %v1057_v34 }
 0x361   :  { %1639 = vmatprep.subr.mxu1 %v1679_v26 }
 0x362   :  { %1640 = vmatpush3.msra.mxu1 %v1056_v39 }
 0x363   :  { %1641 = vmatprep.subr.mxu1 %v1679_v26 }
 0x364   :  { %1642 = vmatpush3.msra.mxu1 %v1055_v61 }
 0x405   :  { %v933_v24 = vpop.f32.mrf.mxu1 }
 0x406   :  { %v934_v25 = vadd.f32 %v933_v24, %v866_v12 }
 0x407   :  { %v1575_v37 = vpop.f32.mrf.mxu1 }
 0x408   :  { %1609 = vmatmul.mubr.f32.vlgmr.msra.gmra.mxu0 %v934_v25 }
 0x4c8   :  { %v1019_v53 = vpop.f32.mrf.mxu0 }
 0x4c9   :  { %v1023_v23 = vsel %vm813_vm1, %v1019_v53, 0.0 }
 0x4ca   :  { %v1024_v54 = vrot.slane %v1023_v23, 4  ;;  %v1610_v49 = vpop.f32.mrf.mxu0 }
 0x4cc   :  { %v1025_v40 = vadd.f32 %v1024_v54, %v1023_v23 }
 0x4ce   :  { %v1026_v31 = vrot.slane %v1025_v40, 2 }
 0x4d0   :  { %v1027_v16 = vadd.f32 %v1026_v31, %v1025_v40 }
 0x4d2   :  { %v1028_v63 = vrot.slane %v1027_v16, 1 }
 0x4d4   :  { %v1029_v42 = vadd.f32 %v1028_v63, %v1027_v16 }
 0x4d6   :  { %v1030_v0 = vmul.f32 0.5, %v1029_v42 }
 0x4d8   :  { %v1031_v22 = vsub.f32 %v1019_v53, %v1030_v0 }
 0x4da   :  { %v1032_v50 = vmul.f32 %v1031_v22, %v1031_v22 }
 0x4dc   :  { %v1033_v32 = vsel %vm813_vm1, %v1032_v50, 0.0 }
 0x4dd   :  { %v1034_v38 = vrot.slane %v1033_v32, 4 }
 0x4df   :  { %v1035_v2 = vadd.f32 %v1034_v38, %v1033_v32 }
 0x4e1   :  { %v1036_v3 = vrot.slane %v1035_v2, 2 }
 0x4e3   :  { %v1037_v26 = vadd.f32 %v1036_v3, %v1035_v2 }
 0x4e5   :  { %v1038_v6 = vrot.slane %v1037_v26, 1 }
 0x4e7   :  { %v1039_v58 = vadd.f32 %v1038_v6, %v1037_v26 }
 0x4e9   :  { %v1040_v41 = vmul.f32 0.5, %v1039_v58 }
 0x4eb   :  { %v1041_v11 = vadd.f32 1e-05, %v1040_v41 }
 0x4ed   :  { %1653 = vrsqrt.f32 %v1041_v11 }
 0x4fa   :  { %v1654_v7 = vpop.eup %1653 }
 0x4fb   :  { %v1043_v48 = vmul.f32 %v1654_v7, %v1031_v22 }
 0x4fd   :  { %v1048_v9 = vmul.f32 %v1047_v5, %v1043_v48 }
 0x4ff   :  { %v1053_v10 = vadd.f32 %v1052_v30, %v1048_v9 }
 0x501   :  { %v1054_v45 = vmax.f32 %v1053_v10, 0.0 }
 0x503   :  { %1644 = vmatmul.mubr.f32.vlgmr.msra.gmra.mxu1 %v1054_v45 }
 0x5c3   :  { %v1141_v15 = vpop.f32.mrf.mxu1 }
 0x5c4   :  { %v1142_v46 = vadd.f32 %v1141_v15, %v1074_v14 }
 0x5c5   :  { %v1645_v17 = vpop.f32.mrf.mxu1 }
 0x5c6   :  { %1145 = vst [vmem:[#allocation2] sm:$0x3] %v1142_v46 }
 0x5c7   :  { %1667 = shalt.err (!%p1664_p4)
}
 0x5c8   :  { %1155 = dma.vmem_to_hbm [thread:$0]  %s1153_s27, 32, %s2448_s8, [#allocation3]  }
 0x5c9   :  { %1676 = dma.done.wait [#allocation3], 32  }
 0x5ca   :  { %1677 = vsyncadd [#allocation3], 4294967264 }
 0x5cb   :  { %1159 = vsyncpa [#allocation3], 1 }

</bundles_post_ra>
